<compile_context>
chip_gen: v6e
topology: v6e:2x2x1
jax: 0.10.0
libtpu: 0.0.40
codegen_flags: <defaults>
</compile_context>

<pallas_src>
import functools

import jax
import jax.numpy as jnp
from jax.experimental import pallas as pl
from jax.experimental.pallas import tpu as pltpu


def _round_up(x: int, m: int) -> int:
    return ((x + m - 1) // m) * m


def _fermi_dirac_kernel(dist_ref, out_ref, *, r: float, t: float):
    d = dist_ref[...].astype(jnp.float32)
    z = (d - r) * (1.0 / t)
    # 1 / (exp(z) + 1): exp goes to the EUP; exact reciprocal keeps 1e-6 parity
    # with the PyTorch reference (kernel is mem-bound, so compute is free).
    probs = pl.reciprocal(jnp.exp(z) + 1.0, approx=False)
    out_ref[...] = probs.astype(out_ref.dtype)


def fermi_dirac_decoder(dist: jax.Array, r: float, t: float,
                        *, lane_cols: int = 512,
                        target_block_bytes: int = 2 << 20) -> jax.Array:
    """Elementwise Fermi-Dirac decoder for an arbitrary-shape `dist` array."""
    orig_shape = dist.shape
    out_dtype = dist.dtype

    flat = dist.reshape(-1)
    n = flat.shape[0]
    itemsize = jnp.dtype(out_dtype).itemsize
    # Sublane alignment: 8 rows for 32-bit, 16 for bf16/f16, 32 for 8-bit
    # (narrow dtypes pack multiple rows per sublane).
    sublane_mult = 8 * max(1, 4 // itemsize)

    # Lane-dense slab: [rows, lane_cols], lane_cols a multiple of 128.
    rows = pl.cdiv(n, lane_cols)

    # Largest row tile (multiple of sublane_mult) keeping one block <= target
    # bytes in the stored dtype.
    bytes_per_row = lane_cols * itemsize
    max_tile_rows = max(
        sublane_mult,
        (target_block_bytes // bytes_per_row) // sublane_mult * sublane_mult)
    tile_rows = min(max_tile_rows, _round_up(rows, sublane_mult))

    padded_rows = _round_up(rows, tile_rows)
    grid_rows = padded_rows // tile_rows

    pad = padded_rows * lane_cols - n
    if pad:
        flat = jnp.pad(flat, (0, pad))
    slab = flat.reshape(padded_rows, lane_cols)

    kernel = functools.partial(_fermi_dirac_kernel, r=float(r), t=float(t))

    out = pl.pallas_call(
        kernel,
        out_shape=jax.ShapeDtypeStruct((padded_rows, lane_cols), out_dtype),
        grid_spec=pltpu.PrefetchScalarGridSpec(
            num_scalar_prefetch=0,
            grid=(grid_rows,),
            in_specs=[pl.BlockSpec((tile_rows, lane_cols), lambda i: (i, 0))],
            out_specs=pl.BlockSpec((tile_rows, lane_cols), lambda i: (i, 0)),
        ),
        compiler_params=pltpu.CompilerParams(
            dimension_semantics=("parallel",)),
    )(slab)

    out_flat = out.reshape(-1)
    if pad:
        out_flat = out_flat[:n]
    return out_flat.reshape(orig_shape)


def fermi_dirac_reference(dist, r, t):
    return 1.0 / (jnp.exp((dist - r) / t) + 1.0)


if __name__ == "__main__":
    # Module hyperparameters (from __init__(r, t)); deterministic constants.
    r = 2.0
    t = 1.0

    key = jax.random.PRNGKey(0)
    k0, k1 = jax.random.split(key)

    # Small edge-distance batch: 16 "rows" of 128 distances each.
    dist = jax.random.uniform(k0, (16, 128), dtype=jnp.float32,
                              minval=0.0, maxval=5.0)
    probs = jax.block_until_ready(fermi_dirac_decoder(dist, r, t))
    ref = fermi_dirac_reference(dist, r, t)
    assert probs.shape == dist.shape and probs.dtype == dist.dtype
    assert jnp.allclose(probs, ref, atol=1e-6, rtol=1e-6), "mismatch vs reference"

    # Non-tile-aligned, odd shape to exercise the pad/reshape path.
    dist2 = jax.random.uniform(k1, (7, 37), dtype=jnp.float32,
                               minval=0.0, maxval=5.0)
    probs2 = jax.block_until_ready(fermi_dirac_decoder(dist2, r, t))
    ref2 = fermi_dirac_reference(dist2, r, t)
    assert probs2.shape == dist2.shape
    assert jnp.allclose(probs2, ref2, atol=1e-6, rtol=1e-6), "mismatch vs reference (ragged)"

    print("KERNEL_OK")
</pallas_src>

<mosaic_0001>
module attributes {stable_mosaic.version = 11 : i64} {
  func.func @_fermi_dirac_kernel(%arg0: i32, %arg1: memref<8x512xf32, #tpu.memory_space<vmem>>, %arg2: memref<8x512xf32, #tpu.memory_space<vmem>>) attributes {dimension_semantics = [#tpu.dimension_semantics<parallel>], iteration_bounds = array<i64: 1>, scalar_prefetch = 0 : i64, scratch_operands = 0 : i64, tpu.core_type = #tpu.core_type<tc>, window_params = [{transform_indices = @transform_0, window_bounds = array<i64: 8, 512>}, {transform_indices = @transform_1, window_bounds = array<i64: 8, 512>}]} {
    %c0 = arith.constant 0 : index
    %c0_0 = arith.constant 0 : index
    %0 = vector.load %arg1[%c0, %c0_0] : memref<8x512xf32, #tpu.memory_space<vmem>>, vector<8x512xf32>
    %cst = arith.constant 2.000000e+00 : f32
    %1 = vector.broadcast %cst : f32 to vector<8x512xf32>
    %2 = arith.subf %0, %1 : vector<8x512xf32>
    %cst_1 = arith.constant 1.000000e+00 : f32
    %3 = vector.broadcast %cst_1 : f32 to vector<8x512xf32>
    %4 = arith.mulf %2, %3 : vector<8x512xf32>
    %5 = math.exp %4 : vector<8x512xf32>
    %cst_2 = arith.constant 1.000000e+00 : f32
    %6 = vector.broadcast %cst_2 : f32 to vector<8x512xf32>
    %7 = arith.addf %5, %6 : vector<8x512xf32>
    %8 = tpu.reciprocal %7 : vector<8x512xf32> -> vector<8x512xf32>
    %c0_3 = arith.constant 0 : index
    %c0_4 = arith.constant 0 : index
    %9 = vector.load %arg2[%c0_3, %c0_4] : memref<8x512xf32, #tpu.memory_space<vmem>>, vector<8x512xf32>
    tpu.vector_store %arg2[%c0_3, %c0_4], %8 {strides = array<i32>} : memref<8x512xf32, #tpu.memory_space<vmem>>, vector<8x512xf32>,
    return
  }
  func.func @transform_0(%arg0: i32) -> (i32, i32) {
    %c0_i32 = arith.constant 0 : i32
    %c0_i32_0 = arith.constant 0 : i32
    return %arg0, %c0_i32 : i32, i32
  }
  func.func @transform_1(%arg0: i32) -> (i32, i32) {
    %c0_i32 = arith.constant 0 : i32
    %c0_i32_0 = arith.constant 0 : i32
    return %arg0, %c0_i32 : i32, i32
  }
}

</mosaic_0001>

<bundles_post_ra>
// kernel: tpu_custom_call.1
= control target key start
LH: loop header
LB: loop body
LE: loop exit
PB: predicated region body
PF: predicated region fallthrough
CT: control target
= control target key end

     0   :  { %6 = vsyncpa [#allocation3], 0  ;;  %s148_s0 = inlined_call_operand.hbm [shape: f32[8,512], index: 0, kind: input, shape index: {}]   ;;  %s149_s1 = inlined_call_operand.hbm [shape: f32[8,512], index: 1, kind: output, shape index: {}]  }
   0x1   :  { %7 = vsyncpa [#allocation4], 0  ;;  %s130_s6 = smov [#allocation2]  }
   0x2   :  { %s14_s7 = sshll.u32 %s130_s6, 4  ;;  %s15_s7 = int_to_ptr.vmem [resolvable:$true] %s14_s7 }
   0x3   :  { %s94_s8 = scalar_lea.vmem %s15_s7, 512  ;;  %p99_p1 = scmp.lt.s32.totalorder %s15_s7, %s15_s7 }
   0x4   :  { %p95_p0 = scmp.ne.s32.totalorder %s15_s7, %s94_s8  ;;  %p100_p2 = scmp.lt.s32.totalorder %s94_s8, %s94_s8 }
   0x6   :  { %p101_p3 = por %p100_p2, %p99_p1 }
   0x8   :  { %p102_p4 = pnand %p101_p3, %p95_p0 }
   0xa   :  { %105 = shalt.err (!%p102_p4)
}
   0xb   :  { %17 = dma.hbm_to_vmem [thread:$0]  %s148_s0, 512, %s15_s7, [#allocation3]  }
   0xc   :  { %126 = dma.done.wait [#allocation3], 512  }
   0xd   :  { %127 = vsyncadd [#allocation3], 4294966784  ;;  %v21_v0 = vld [vmem:[#allocation2] sm:$0xff]  ;;  %v22_v1 = vld [vmem:[#allocation2 + $0x8] sm:$0xff]  ;;  %s131_s0 = smov [#allocation5]  }
   0xe   :  { %v23_v2 = vld [vmem:[#allocation2 + $0x10] sm:$0xff]  ;;  %v64_v3 = vadd.f32 -2.0, %v21_v0  ;;  %v65_v4 = vadd.f32 -2.0, %v22_v1  ;;  %v24_v6 = vld [vmem:[#allocation2 + $0x18] sm:$0xff]  ;;  %s55_s11 = sshll.u32 %s131_s0, 4  ;;  %s56_s11 = int_to_ptr.vmem [resolvable:$true] %s55_s11 }
   0xf   :  { %v66_v5 = vadd.f32 -2.0, %v23_v2  ;;  %v67_v7 = vadd.f32 -2.0, %v24_v6  ;;  %s106_s12 = scalar_lea.vmem %s56_s11, 512  ;;  %p111_p6 = scmp.lt.s32.totalorder %s56_s11, %s56_s11 }
  0x10   :  { %v29_v8 = vmul.f32 1.442695, %v64_v3  ;;  %v31_v9 = vmul.f32 1.442695, %v65_v4  ;;  %p107_p5 = scmp.ne.s32.totalorder %s56_s11, %s106_s12  ;;  %p112_p7 = scmp.lt.s32.totalorder %s106_s12, %s106_s12 }
  0x11   :  { %v33_v10 = vmul.f32 1.442695, %v66_v5  ;;  %v35_v11 = vmul.f32 1.442695, %v67_v7 }
  0x12   :  { %70 = vpow2.f32 %v29_v8  ;;  %p113_p8 = por %p112_p7, %p111_p6 }
  0x13   :  { %72 = vpow2.f32 %v31_v9 }
  0x14   :  { %74 = vpow2.f32 %v33_v10  ;;  %p114_p9 = pnand %p113_p8, %p107_p5 }
  0x15   :  { %76 = vpow2.f32 %v35_v11 }
  0x1f   :  { %v71_v12 = vpop.eup %70 }
  0x20   :  { %v73_v13 = vpop.eup %72  ;;  %v37_v14 = vadd.f32 1.0, %v71_v12 }
  0x21   :  { %v75_v15 = vpop.eup %74  ;;  %v38_v16 = vadd.f32 1.0, %v73_v13 }
  0x22   :  { %v77_v17 = vpop.eup %76  ;;  %78 = vrcp.f32 %v37_v14  ;;  %v39_v18 = vadd.f32 1.0, %v75_v15 }
  0x23   :  { %80 = vrcp.f32 %v38_v16  ;;  %v40_v19 = vadd.f32 1.0, %v77_v17 }
  0x24   :  { %82 = vrcp.f32 %v39_v18 }
  0x25   :  { %84 = vrcp.f32 %v40_v19 }
  0x2f   :  { %v79_v20 = vpop.eup %78 }
  0x30   :  { %v81_v21 = vpop.eup %80  ;;  %45 = vst [vmem:[#allocation5] sm:$0xff] %v79_v20 }
  0x31   :  { %v83_v22 = vpop.eup %82  ;;  %46 = vst [vmem:[#allocation5 + $0x8] sm:$0xff] %v81_v21 }
  0x32   :  { %v85_v23 = vpop.eup %84  ;;  %47 = vst [vmem:[#allocation5 + $0x10] sm:$0xff] %v83_v22 }
  0x33   :  { %48 = vst [vmem:[#allocation5 + $0x18] sm:$0xff] %v85_v23 }
  0x34   :  { %117 = shalt.err (!%p114_p9)
}
  0x35   :  { %58 = dma.vmem_to_hbm [thread:$0]  %s56_s11, 512, %s149_s1, [#allocation4]  }
  0x36   :  { %128 = dma.done.wait [#allocation4], 512  }
  0x37   :  { %129 = vsyncadd [#allocation4], 4294966784 }
  0x38   :  { %62 = vsyncpa [#allocation3], 1 }
  0x39   :  { %63 = vsyncpa [#allocation4], 1 }

</bundles_post_ra>
